<compile_context>
chip_gen: v7x
topology: tpu7x:2x2x1
jax: 0.10.0
libtpu: 0.0.40
codegen_flags: <defaults>
</compile_context>

<pallas_src>
import jax
import jax.numpy as jnp
import numpy as np
from jax.experimental import pallas as pl
from jax.experimental.pallas import tpu as pltpu

# ----------------------------------------------------------------------------
# Deterministic "opt" configuration (stands in for the original argparse opt).
# ----------------------------------------------------------------------------
NUM_SEMANTICS = 6
NUM_THINGS = 2
THINGS_STUFF = True
PANOPTIC = True
INSTANCE_TYPE = ("center_offset", "edge", "density")
STUFF_IDX = [0, 1, 2]
THINGS_IDX = [3, 4, 5]

OUT_SEMANTICS = NUM_SEMANTICS + 1 if THINGS_STUFF else NUM_SEMANTICS   # 7
N_STUFF = len(STUFF_IDX)                                               # 3
N_THINGS_CH = len(THINGS_IDX)                                          # 3
INS_CH = 1 + 2 + 1 + NUM_THINGS                                        # 6
C_IN = OUT_SEMANTICS + INS_CH                                          # 13
C_OUT = NUM_SEMANTICS + INS_CH                                         # 12

# The kernel's static channel slices require these exact, contiguous layouts.
assert THINGS_STUFF and PANOPTIC
assert set(INSTANCE_TYPE) == {"center_offset", "edge", "density"}
assert STUFF_IDX == list(range(N_STUFF)), "kernel assumes contiguous stuff_idx"
assert THINGS_IDX == list(range(N_STUFF, N_STUFF + N_THINGS_CH)), \
    "kernel assumes contiguous things_idx following stuff_idx"

MAX_TILE_HW = 32768   # lanes per grid step (multiple of 128); mem-bound sweet spot


def _round_up(a, b):
    return ((a + b - 1) // b) * b


def _num_tensorcores():
    """Conservative per-chip TensorCore count (2 only on v7x)."""
    try:
        kind = (jax.devices()[0].device_kind or "").lower()
        if "v7" in kind or "7x" in kind:
            return 2
    except Exception:
        pass
    return 1


def base_activation_kernel(x_ref, o_ref):
    out_dt = o_ref.dtype

    # ---- semantic activation (things_stuff branch) -------------------------
    sem = x_ref[0, 0:OUT_SEMANTICS].astype(jnp.float32)                 # (7, T)
    # (7,1) group mask: rows 0..2 = stuff, rows 3..6 = things(+extra)
    is_stuff = jax.lax.broadcasted_iota(jnp.int32, (OUT_SEMANTICS, 1), 0) < N_STUFF

    m_stuff = jnp.max(sem[0:N_STUFF], axis=0, keepdims=True)            # (1, T)
    m_tl = jnp.max(sem[N_STUFF:OUT_SEMANTICS], axis=0, keepdims=True)   # (1, T)
    # single exp pass over all 7 semantic channels (per-group max via mask select)
    e = jnp.exp(sem - jnp.where(is_stuff, m_stuff, m_tl))               # (7, T)

    inv_stuff = 1.0 / jnp.sum(e[0:N_STUFF], axis=0, keepdims=True)      # (1, T)
    inv_tl = 1.0 / jnp.sum(e[N_STUFF:OUT_SEMANTICS], axis=0, keepdims=True)
    p_last = e[OUT_SEMANTICS - 1:OUT_SEMANTICS] * inv_tl                # (1, T)

    # stuff rows scaled by softmax*p_last, things rows by inv_tl; trailing
    # semantic channel dropped.  ONE multiply, ONE store for rows 0:6.
    scale = jnp.where(is_stuff[0:NUM_SEMANTICS], inv_stuff * p_last, inv_tl)   # (6, T)
    o_ref[0, 0:NUM_SEMANTICS] = (e[0:NUM_SEMANTICS] * scale).astype(out_dt)

    # ---- instance activations (panoptic branch) ----------------------------
    ins = x_ref[0, OUT_SEMANTICS:C_IN].astype(jnp.float32)              # (6, T)
    # rows: 0 center (sigmoid), 1:3 offset (tanh), 3 edge (sigmoid),
    #       4:6 density (sigmoid)
    ch = jax.lax.broadcasted_iota(jnp.int32, (INS_CH, 1), 0)            # (6, 1)
    is_offset = (ch >= 1) & (ch < 3)
    act = jnp.where(is_offset, jnp.tanh(ins), jax.nn.sigmoid(ins))      # (6, T)
    o_ref[0, NUM_SEMANTICS:NUM_SEMANTICS + INS_CH] = act.astype(out_dt)


def base_activation(x):
    """x: (N, C_IN, H, W) NCHW, f32 or bf16 (dtype preserved through HBM)."""
    N, C, H, W = x.shape
    assert C == C_IN, f"expected {C_IN} input channels, got {C}"
    HW = H * W
    dtype = x.dtype

    # Largest lane-dense tile up to MAX_TILE_HW (multiple of 128).
    tile = min(MAX_TILE_HW, _round_up(HW, 128))
    grid_hw = pl.cdiv(HW, tile)
    # Only split a single-block workload if the chip actually has 2 TensorCores.
    if N * grid_hw < 2 and tile > 128 and _num_tensorcores() >= 2:
        tile = max(128, _round_up(tile // 2, 128))
        grid_hw = pl.cdiv(HW, tile)

    xf = x.reshape(N, C_IN, HW)   # metadata-only reshape; no pad, no copy

    out = pl.pallas_call(
        base_activation_kernel,
        out_shape=jax.ShapeDtypeStruct((N, C_OUT, HW), dtype),
        grid=(N, grid_hw),
        in_specs=[pl.BlockSpec((1, C_IN, tile), lambda n, t: (n, 0, t))],
        out_specs=pl.BlockSpec((1, C_OUT, tile), lambda n, t: (n, 0, t)),
        compiler_params=pltpu.CompilerParams(
            dimension_semantics=("parallel", "parallel"),
            vmem_limit_bytes=32 * 1024 * 1024),
    )(xf)

    return out.reshape(N, C_OUT, H, W)   # metadata-only reshape; no slice


# ----------------------------------------------------------------------------
# Pure-JAX reference of the PyTorch forward (as_list=False, return_sem_mask=False)
# ----------------------------------------------------------------------------
def reference(x):
    x = x.astype(jnp.float32)
    sem = x[:, :OUT_SEMANTICS]
    ins = x[:, OUT_SEMANTICS:]
    stuff = jax.nn.softmax(sem[:, jnp.array(STUFF_IDX)], axis=1)
    tl = jax.nn.softmax(
        sem[:, jnp.array(THINGS_IDX + [OUT_SEMANTICS - 1])], axis=1)
    stuff = stuff * tl[:, -1:]
    things = tl[:, :-1]
    sem_out = jnp.zeros((x.shape[0], NUM_SEMANTICS, x.shape[2], x.shape[3]),
                        jnp.float32)
    sem_out = sem_out.at[:, jnp.array(STUFF_IDX)].set(stuff)
    sem_out = sem_out.at[:, jnp.array(THINGS_IDX)].set(things)
    ins_center = jax.nn.sigmoid(ins[:, 0:1])
    ins_offset = jnp.tanh(ins[:, 1:3])
    ins_edge = jax.nn.sigmoid(ins[:, 3:4])
    ins_density = jax.nn.sigmoid(ins[:, 4:4 + NUM_THINGS])
    return jnp.concatenate(
        [sem_out, ins_center, ins_offset, ins_edge, ins_density], axis=1)


if __name__ == "__main__":
    key = jax.random.PRNGKey(0)

    # Case 1: HW a multiple of 128 (fully dense blocks).
    x1 = jax.random.normal(key, (2, C_IN, 16, 16), dtype=jnp.float32)
    out1 = jax.block_until_ready(base_activation(x1))
    ref1 = jax.block_until_ready(reference(x1))
    assert out1.shape == (2, C_OUT, 16, 16), out1.shape
    np.testing.assert_allclose(np.asarray(out1), np.asarray(ref1),
                               rtol=1e-5, atol=1e-5)

    # Case 2: HW not a multiple of 128 and N == 1 (ragged last block, no pad/slice).
    x2 = jax.random.normal(jax.random.PRNGKey(0), (1, C_IN, 15, 15),
                           dtype=jnp.float32)
    out2 = jax.block_until_ready(base_activation(x2))
    ref2 = jax.block_until_ready(reference(x2))
    assert out2.shape == (1, C_OUT, 15, 15), out2.shape
    np.testing.assert_allclose(np.asarray(out2), np.asarray(ref2),
                               rtol=1e-5, atol=1e-5)

    # Case 3: bf16 through HBM (halves traffic on mem-bound chips); math stays f32.
    x3 = jax.random.normal(jax.random.PRNGKey(0), (2, C_IN, 16, 16),
                           dtype=jnp.bfloat16)
    out3 = jax.block_until_ready(base_activation(x3))
    ref3 = jax.block_until_ready(reference(x3))
    assert out3.dtype == jnp.bfloat16 and out3.shape == (2, C_OUT, 16, 16)
    np.testing.assert_allclose(np.asarray(out3.astype(jnp.float32)),
                               np.asarray(ref3), rtol=1e-2, atol=1e-2)

    print("KERNEL_OK")
</pallas_src>

<mosaic_0001>
module attributes {stable_mosaic.version = 11 : i64} {
  func.func @base_activation_kernel(%arg0: i32, %arg1: i32, %arg2: memref<1x13x256xf32, #tpu.memory_space<vmem>>, %arg3: memref<1x12x256xf32, #tpu.memory_space<vmem>>) attributes {dimension_semantics = [#tpu.dimension_semantics<parallel>, #tpu.dimension_semantics<parallel>], iteration_bounds = array<i64: 2, 1>, scalar_prefetch = 0 : i64, scratch_operands = 0 : i64, tpu.core_type = #tpu.core_type<tc>, window_params = [{transform_indices = @transform_0, window_bounds = array<i64: 1, 13, 256>}, {transform_indices = @transform_1, window_bounds = array<i64: 1, 12, 256>}]} {
    %c0 = arith.constant 0 : index
    %c0_0 = arith.constant 0 : index
    %c0_1 = arith.constant 0 : index
    %0 = vector.load %arg2[%c0, %c0_0, %c0_1] : memref<1x13x256xf32, #tpu.memory_space<vmem>>, vector<1x7x256xf32>
    %1 = vector.shape_cast %0 : vector<1x7x256xf32> to vector<7x256xf32>
    %2 = tpu.iota {dimensions = array<i32: 0>} : vector<7x1xi32>
    %c3_i32 = arith.constant 3 : i32
    %3 = vector.broadcast %c3_i32 : i32 to vector<7x1xi32>
    %4 = arith.cmpi slt, %2, %3 : vector<7x1xi32>
    %5 = vector.extract_strided_slice %1 {offsets = [0, 0], sizes = [3, 256], strides = [1, 1]} : vector<7x256xf32> to vector<3x256xf32>
    %cst = arith.constant dense<0xFF800000> : vector<256xf32>
    %6 = vector.multi_reduction <maximumf>, %5, %cst [0] : vector<3x256xf32> to vector<256xf32>
    %7 = vector.shape_cast %6 : vector<256xf32> to vector<1x256xf32>
    %8 = vector.extract_strided_slice %1 {offsets = [3, 0], sizes = [4, 256], strides = [1, 1]} : vector<7x256xf32> to vector<4x256xf32>
    %cst_2 = arith.constant dense<0xFF800000> : vector<256xf32>
    %9 = vector.multi_reduction <maximumf>, %8, %cst_2 [0] : vector<4x256xf32> to vector<256xf32>
    %10 = vector.shape_cast %9 : vector<256xf32> to vector<1x256xf32>
    %11 = vector.shape_cast %4 : vector<7x1xi1> to vector<7x1xi1>
    %12 = vector.broadcast %11 : vector<7x1xi1> to vector<7x256xi1>
    %13 = vector.shape_cast %7 : vector<1x256xf32> to vector<1x256xf32>
    %14 = vector.broadcast %13 : vector<1x256xf32> to vector<7x256xf32>
    %15 = vector.shape_cast %10 : vector<1x256xf32> to vector<1x256xf32>
    %16 = vector.broadcast %15 : vector<1x256xf32> to vector<7x256xf32>
    %17 = arith.select %12, %14, %16 : vector<7x256xi1>, vector<7x256xf32>
    %18 = arith.subf %1, %17 : vector<7x256xf32>
    %19 = math.exp %18 : vector<7x256xf32>
    %20 = vector.extract_strided_slice %19 {offsets = [0, 0], sizes = [3, 256], strides = [1, 1]} : vector<7x256xf32> to vector<3x256xf32>
    %cst_3 = arith.constant dense<0.000000e+00> : vector<256xf32>
    %21 = vector.multi_reduction <add>, %20, %cst_3 [0] : vector<3x256xf32> to vector<256xf32>
    %22 = vector.shape_cast %21 : vector<256xf32> to vector<1x256xf32>
    %cst_4 = arith.constant 1.000000e+00 : f32
    %23 = vector.broadcast %cst_4 : f32 to vector<1x256xf32>
    %24 = arith.divf %23, %22 : vector<1x256xf32>
    %25 = vector.extract_strided_slice %19 {offsets = [3, 0], sizes = [4, 256], strides = [1, 1]} : vector<7x256xf32> to vector<4x256xf32>
    %cst_5 = arith.constant dense<0.000000e+00> : vector<256xf32>
    %26 = vector.multi_reduction <add>, %25, %cst_5 [0] : vector<4x256xf32> to vector<256xf32>
    %27 = vector.shape_cast %26 : vector<256xf32> to vector<1x256xf32>
    %cst_6 = arith.constant 1.000000e+00 : f32
    %28 = vector.broadcast %cst_6 : f32 to vector<1x256xf32>
    %29 = arith.divf %28, %27 : vector<1x256xf32>
    %30 = vector.extract_strided_slice %19 {offsets = [6, 0], sizes = [1, 256], strides = [1, 1]} : vector<7x256xf32> to vector<1x256xf32>
    %31 = arith.mulf %30, %29 : vector<1x256xf32>
    %32 = vector.extract_strided_slice %4 {offsets = [0, 0], sizes = [6, 1], strides = [1, 1]} : vector<7x1xi1> to vector<6x1xi1>
    %33 = arith.mulf %24, %31 : vector<1x256xf32>
    %34 = vector.shape_cast %32 : vector<6x1xi1> to vector<6x1xi1>
    %35 = vector.broadcast %34 : vector<6x1xi1> to vector<6x256xi1>
    %36 = vector.shape_cast %33 : vector<1x256xf32> to vector<1x256xf32>
    %37 = vector.broadcast %36 : vector<1x256xf32> to vector<6x256xf32>
    %38 = vector.shape_cast %29 : vector<1x256xf32> to vector<1x256xf32>
    %39 = vector.broadcast %38 : vector<1x256xf32> to vector<6x256xf32>
    %40 = arith.select %35, %37, %39 : vector<6x256xi1>, vector<6x256xf32>
    %41 = vector.extract_strided_slice %19 {offsets = [0, 0], sizes = [6, 256], strides = [1, 1]} : vector<7x256xf32> to vector<6x256xf32>
    %42 = arith.mulf %41, %40 : vector<6x256xf32>
    %c0_7 = arith.constant 0 : index
    %c0_8 = arith.constant 0 : index
    %c0_9 = arith.constant 0 : index
    %43 = vector.load %arg3[%c0_7, %c0_8, %c0_9] : memref<1x12x256xf32, #tpu.memory_space<vmem>>, vector<1x6x256xf32>
    %44 = vector.shape_cast %43 : vector<1x6x256xf32> to vector<6x256xf32>
    %45 = vector.shape_cast %42 : vector<6x256xf32> to vector<1x6x256xf32>
    tpu.vector_store %arg3[%c0_7, %c0_8, %c0_9], %45 {strides = array<i32>} : memref<1x12x256xf32, #tpu.memory_space<vmem>>, vector<1x6x256xf32>,
    %c0_10 = arith.constant 0 : index
    %c7 = arith.constant 7 : index
    %c0_11 = arith.constant 0 : index
    %46 = vector.load %arg2[%c0_10, %c7, %c0_11] : memref<1x13x256xf32, #tpu.memory_space<vmem>>, vector<1x6x256xf32>
    %47 = vector.shape_cast %46 : vector<1x6x256xf32> to vector<6x256xf32>
    %48 = tpu.iota {dimensions = array<i32: 0>} : vector<6x1xi32>
    %c1_i32 = arith.constant 1 : i32
    %49 = vector.broadcast %c1_i32 : i32 to vector<6x1xi32>
    %50 = arith.cmpi sge, %48, %49 : vector<6x1xi32>
    %c3_i32_12 = arith.constant 3 : i32
    %51 = vector.broadcast %c3_i32_12 : i32 to vector<6x1xi32>
    %52 = arith.cmpi slt, %48, %51 : vector<6x1xi32>
    %53 = arith.andi %50, %52 : vector<6x1xi1>
    %54 = math.tanh %47 : vector<6x256xf32>
    %55 = arith.negf %47 : vector<6x256xf32>
    %56 = math.exp %55 : vector<6x256xf32>
    %cst_13 = arith.constant 1.000000e+00 : f32
    %57 = vector.broadcast %cst_13 : f32 to vector<6x256xf32>
    %58 = arith.addf %57, %56 : vector<6x256xf32>
    %59 = arith.divf %57, %58 : vector<6x256xf32>
    %60 = vector.shape_cast %53 : vector<6x1xi1> to vector<6x1xi1>
    %61 = vector.broadcast %60 : vector<6x1xi1> to vector<6x256xi1>
    %62 = arith.select %61, %54, %59 : vector<6x256xi1>, vector<6x256xf32>
    %c0_14 = arith.constant 0 : index
    %c6 = arith.constant 6 : index
    %c0_15 = arith.constant 0 : index
    %63 = vector.load %arg3[%c0_14, %c6, %c0_15] : memref<1x12x256xf32, #tpu.memory_space<vmem>>, vector<1x6x256xf32>
    %64 = vector.shape_cast %63 : vector<1x6x256xf32> to vector<6x256xf32>
    %65 = vector.shape_cast %62 : vector<6x256xf32> to vector<1x6x256xf32>
    tpu.vector_store %arg3[%c0_14, %c6, %c0_15], %65 {strides = array<i32>} : memref<1x12x256xf32, #tpu.memory_space<vmem>>, vector<1x6x256xf32>,
    return
  }
  func.func @transform_0(%arg0: i32, %arg1: i32) -> (i32, i32, i32) {
    %c0_i32 = arith.constant 0 : i32
    %c0_i32_0 = arith.constant 0 : i32
    return %arg0, %c0_i32, %arg1 : i32, i32, i32
  }
  func.func @transform_1(%arg0: i32, %arg1: i32) -> (i32, i32, i32) {
    %c0_i32 = arith.constant 0 : i32
    %c0_i32_0 = arith.constant 0 : i32
    return %arg0, %c0_i32, %arg1 : i32, i32, i32
  }
}

</mosaic_0001>

<bundles_post_ra>
// kernel: tpu_custom_call.1
= control target key start
LH: loop header
LB: loop body
LE: loop exit
PB: predicated region body
PF: predicated region fallthrough
CT: control target
= control target key end

     0   :  { %s533_s6 = smov 0   ;;  %s535_s7 = smov 0   ;;  %s632_s0 = inlined_call_operand.vmem [shape: f32[2,13,256], index: 0, kind: input, shape index: {}]   ;;  %s633_s1 = inlined_call_operand.vmem [shape: f32[2,12,256], index: 1, kind: output, shape index: {}]  }
   0x1   :  { %s537_s8 = smov 0  }
   0x2 LB: > { %s23_s9 = sadd.s32 1, %s517_s7  ;;  %p426_p0 = scmp.ge.s32.totalorder %s521_s8, 1  ;;  %s521_s8 = sphi %s537_s8, %s11_s8   ;;  %s517_s7 = sphi %s535_s7, %s637_s7   ;;  %s513_s6 = sphi %s533_s6, %s636_s6  }
   0x3   : > { %p25_p1 = scmp.ge.s32.totalorder %s23_s9, 2  ;;  %p108_p2 = scmp.lt.s32.totalorder %s521_s8, 3 }
   0x5   : > { %s639_s9 = smov (%p25_p1, %s23_s9), 0  ;;  %p109_p3 = pnand %p426_p0, %p108_p2 }
   0x6   : > { %p137_p4 = scmp.lt.s32.totalorder (!%p109_p3), %s513_s6, 1  ;;  %vm161_vm0 = vcmask (!%p109_p3), 1042432   ;;  %vm176_vm1 = vcmask (!%p109_p3), 1046531   ;;  %v158_v12 = vlaneseq (!%p109_p3)  ;;  %vm225_vm3 = vcmask (!%p109_p3), 1043456  }
   0x7   : > { %112 = sbr.rel (%p109_p3) target bundleno = 84 (0x54), region = 24  ;;  %vm302_vm4 = vcmask (!%p109_p3), 1040384  }
   0x8   : > { %v568_v24 = vshrl.u32 (!%p109_p3), %v158_v12, 7 }
   0xa   : > { %vm160_vm2 = vcmp.lt.s32.totalorder (!%p109_p3), %v568_v24, 3  ;;  %vm266_vm5 = vcmp.ge.s32.totalorder (!%p109_p3), %v568_v24, 1 }
   0xb   : > { %vm592_vm6 = vmand (!%p109_p3), %vm266_vm5, %vm160_vm2 }
   0xe   : > { %s641_s6 = smov (!%p137_p4, %s513_s6), 1 }
   0xf   : > { %s437_s10 = sshll.u32 %s641_s6, 5 }
  0x10   : > { %s559_s13 = scalar_lea.vmem %s632_s0, %s437_s10  ;;  %s602_s16 = scalar_lea.vmem %s633_s1, %s437_s10 }
  0x11   : > { %v156_v0 = vld [vmem:[%s559_s13] sm:$0x7f]  ;;  %v157_v1 = vld [vmem:[%s559_s13 + $0x8] sm:$0x7f]  ;;  %v262_v2 = vld [vmem:[%s559_s13] sm:$0x80] }
  0x12   : > { %v162_v3 = vsel %vm161_vm0, %v156_v0, -inf  ;;  %v169_v4 = vsel %vm161_vm0, %v157_v1, -inf  ;;  %v177_v5 = vsel %vm176_vm1, %v156_v0, -inf  ;;  %v184_v6 = vsel %vm176_vm1, %v157_v1, -inf  ;;  %v264_v11 = vld [vmem:[%s559_s13 + $0x10] sm:$0x1f] }
  0x13   : > { %v163_v7 = vrot.slane %v162_v3, 4  ;;  %v170_v8 = vrot.slane %v169_v4, 4  ;;  %v178_v9 = vrot.slane %v177_v5, 4  ;;  %v185_v10 = vrot.slane %v184_v6, 4  ;;  %v263_v23 = vld [vmem:[%s559_s13 + $0x8] sm:$0x80] }
  0x14   : > { %v431_v13 = vmul.f32 -1.442695, %v262_v2  ;;  %v433_v18 = vmul.f32 -1.442695, %v264_v11  ;;  %v265_v29 = vld [vmem:[%s559_s13 + $0x18] sm:$0x1f] }
  0x15   : > { %v164_v14 = vmax.f32 %v162_v3, %v163_v7  ;;  %v171_v15 = vmax.f32 %v169_v4, %v170_v8  ;;  %v179_v16 = vmax.f32 %v177_v5, %v178_v9  ;;  %v186_v17 = vmax.f32 %v184_v6, %v185_v10 }
  0x16   : > { %463 = vpow2.f32 %v431_v13  ;;  %v432_v30 = vmul.f32 -1.442695, %v263_v23  ;;  %v434_v35 = vmul.f32 -1.442695, %v265_v29 }
  0x17   : > { %v165_v19 = vrot.slane %v164_v14, 2  ;;  %v172_v20 = vrot.slane %v171_v15, 2  ;;  %v180_v21 = vrot.slane %v179_v16, 2  ;;  %v187_v22 = vrot.slane %v186_v17, 2 }
  0x18   : > { %465 = vpow2.f32 %v433_v18 }
  0x19   : > { %v166_v25 = vmax.f32 %v164_v14, %v165_v19  ;;  %v173_v26 = vmax.f32 %v171_v15, %v172_v20  ;;  %v181_v27 = vmax.f32 %v179_v16, %v180_v21  ;;  %v188_v28 = vmax.f32 %v186_v17, %v187_v22 }
  0x1a   : > { %467 = vtanh.f32 %v262_v2 }
  0x1b   : > { %v167_v31 = vrot.slane %v166_v25, 1  ;;  %v174_v32 = vrot.slane %v173_v26, 1  ;;  %v182_v33 = vrot.slane %v181_v27, 1  ;;  %v189_v34 = vrot.slane %v188_v28, 1 }
  0x1c   : > { %469 = vtanh.f32 %v264_v11 }
  0x1d   : > { %v168_v36 = vmax.f32 %v166_v25, %v167_v31  ;;  %v175_v37 = vmax.f32 %v173_v26, %v174_v32  ;;  %v183_v38 = vmax.f32 %v181_v27, %v182_v33  ;;  %v190_v39 = vmax.f32 %v188_v28, %v189_v34 }
  0x1e   : > { %471 = vpow2.f32 %v432_v30 }
  0x1f   : > { %v193_v40 = vsel %vm160_vm2, %v168_v36, %v183_v38  ;;  %v194_v41 = vsel %vm160_vm2, %v175_v37, %v190_v39  ;;  %473 = vpow2.f32 %v434_v35 }
  0x20   : > { %v195_v42 = vsub.f32 %v156_v0, %v193_v40  ;;  %v196_v43 = vsub.f32 %v157_v1, %v194_v41  ;;  %v464_v44 = vpop.eup %463  ;;  %475 = vtanh.f32 %v263_v23 }
  0x21   : > { %v284_v47 = vadd.f32 1.0, %v464_v44  ;;  %477 = vtanh.f32 %v265_v29 }
  0x22   : > { %v197_v45 = vmul.f32 1.442695, %v195_v42  ;;  %v199_v46 = vmul.f32 1.442695, %v196_v43  ;;  %v466_v48 = vpop.eup %465 }
  0x23   : > { %v286_v49 = vadd.f32 1.0, %v466_v48 }
  0x24   : > { %479 = vpow2.f32 %v197_v45  ;;  %v468_v50 = vpop.eup %467 }
  0x25   : > { %481 = vpow2.f32 %v199_v46  ;;  %v303_v58 = vrot.slane %v468_v50, 7 }
  0x26   : > { %483 = vrcp.f32 %v284_v47  ;;  %v470_v51 = vpop.eup %469 }
  0x27   : > { %485 = vrcp.f32 %v286_v49  ;;  %v304_v59 = vrot.slane %v470_v51, 7 }
  0x28   : > { %v472_v52 = vpop.eup %471 }
  0x29   : > { %v474_v53 = vpop.eup %473  ;;  %v285_v54 = vadd.f32 1.0, %v472_v52  ;;  %v305_v7 = vsel %vm302_vm4, %v303_v58, %v304_v59 }
  0x2a   : > { %v287_v55 = vadd.f32 1.0, %v474_v53  ;;  %v476_v56 = vpop.eup %475  ;;  %v250_v53 = vsub.s32 6, %v568_v24 }
  0x2b   : > { %487 = vrcp.f32 %v285_v54  ;;  %v478_v57 = vpop.eup %477  ;;  %v306_v16 = vrot.slane %v476_v56, 7 }
  0x2c   : > { %489 = vrcp.f32 %v287_v55  ;;  %v307_v20 = vrot.slane %v478_v57, 7 }
  0x2e   : > { %v576_v60 = vpop.eup %479  ;;  %v308_v35 = vsel %vm302_vm4, %v306_v16, %v307_v20 }
  0x2f   : > { %v578_v61 = vpop.eup %481  ;;  %v201_v62 = vsel %vm161_vm0, %v576_v60, 0.0  ;;  %v221_v63 = vrot.slane %v576_v60, 3 }
  0x30   : > { %v484_v0 = vpop.eup %483  ;;  %v202_v1 = vrot.slane %v201_v62, 4  ;;  %v208_v2 = vsel %vm161_vm0, %v578_v61, 0.0  ;;  %v222_v3 = vrot.slane %v578_v61, 3 }
  0x31   : > { %v486_v4 = vpop.eup %485  ;;  %v226_v5 = vsel %vm225_vm3, %v221_v63, 0.0  ;;  %v209_v6 = vrot.slane %v208_v2, 4  ;;  %v315_v8 = vrot.slane %v484_v0, 7 }
  0x32   : > { %v203_v9 = vadd.f32 %v202_v1, %v201_v62  ;;  %v227_v10 = vrot.slane %v226_v5, 4  ;;  %v233_v11 = vsel %vm225_vm3, %v222_v3, 0.0  ;;  %v316_v13 = vrot.slane %v486_v4, 7 }
  0x33   : > { %v210_v14 = vadd.f32 %v209_v6, %v208_v2  ;;  %v234_v15 = vrot.slane %v233_v11, 4 }
  0x34   : > { %v204_v17 = vrot.slane %v203_v9, 2  ;;  %v228_v18 = vadd.f32 %v227_v10, %v226_v5  ;;  %v317_v19 = vsel %vm302_vm4, %v315_v8, %v316_v13 }
  0x35   : > { %v211_v21 = vrot.slane %v210_v14, 2  ;;  %v235_v22 = vadd.f32 %v234_v15, %v233_v11  ;;  %v323_v23 = vsel %vm592_vm6, %v305_v7, %v317_v19  ;;  %v488_v25 = vpop.eup %487 }
  0x36   : > { %v205_v26 = vadd.f32 %v204_v17, %v203_v9  ;;  %v229_v27 = vrot.slane %v228_v18, 2  ;;  %v327_v28 = vrot.slane %v323_v23, 2  ;;  %v490_v29 = vpop.eup %489  ;;  %v318_v32 = vrot.slane %v488_v25, 7 }
  0x37   : > { %v212_v30 = vadd.f32 %v211_v21, %v210_v14  ;;  %v236_v31 = vrot.slane %v235_v22, 2  ;;  %v319_v36 = vrot.slane %v490_v29, 7 }
  0x38   : > { %v206_v33 = vrot.slane %v205_v26, 1  ;;  %v230_v34 = vadd.f32 %v229_v27, %v228_v18  ;;  %331 = vst [vmem:[%s602_s16 + $0x10] ss:$-12 sps:$4 sm:$0xcf] %v327_v28  }
  0x39   : > { %v213_v37 = vrot.slane %v212_v30, 1  ;;  %v237_v38 = vadd.f32 %v236_v31, %v235_v22  ;;  %v320_v41 = vsel %vm302_vm4, %v318_v32, %v319_v36 }
  0x3a   : > { %v207_v39 = vadd.f32 %v206_v33, %v205_v26  ;;  %v231_v40 = vrot.slane %v230_v34, 1  ;;  %v324_v44 = vsel %vm592_vm6, %v308_v35, %v320_v41 }
  0x3b   : > { %v214_v42 = vadd.f32 %v213_v37, %v212_v30  ;;  %v238_v43 = vrot.slane %v237_v38, 1  ;;  %v328_v46 = vrot.slane %v324_v44, 2 }
  0x3c   : > { %491 = vrcp.f32 %v207_v39  ;;  %v232_v45 = vadd.f32 %v231_v40, %v230_v34 }
  0x3d   : > { %493 = vrcp.f32 %v214_v42  ;;  %v239_v47 = vadd.f32 %v238_v43, %v237_v38  ;;  %332 = vst [vmem:[%s602_s16 + $0x18] ss:$-12 sps:$4 sm:$0xcf] %v328_v46  }
  0x3e   : > { %495 = vrcp.f32 %v232_v45 }
  0x3f   : > { %497 = vrcp.f32 %v239_v47 }
  0x46   : > { %v492_v48 = vpop.eup %491 }
  0x47   : > { %v494_v49 = vpop.eup %493 }
  0x48   : > { %v496_v50 = vpop.eup %495 }
  0x49   : > { %v498_v51 = vpop.eup %497  ;;  %v244_v52 = vmul.f32 %v496_v50, %v576_v60 }
  0x4a   : > { %v245_v54 = vmul.f32 %v498_v51, %v578_v61 }
  0x4b   : > { %v246_v55 = vmul.f32 %v492_v48, %v244_v52 }
  0x4c   : > { %v247_v56 = vmul.f32 %v494_v49, %v245_v54 }
  0x4d   : > { %v251_v57 = vrot.slane %v246_v55, %v250_v53 }
  0x4e   : > { %v255_v58 = vrot.slane %v247_v56, %v250_v53 }
  0x4f   : > { %v256_v59 = vsel %vm160_vm2, %v251_v57, %v496_v50 }
  0x50   : > { %v258_v62 = vmul.f32 %v576_v60, %v256_v59  ;;  %v257_v63 = vsel %vm160_vm2, %v255_v58, %v498_v51 }
  0x51   : > { %v259_v0 = vmul.f32 %v578_v61, %v257_v63 }
  0x52   : > { %260 = vst [vmem:[%s602_s16] sm:$0x3f] %v258_v62 }
  0x53   : > { %261 = vst [vmem:[%s602_s16 + $0x8] sm:$0x3f] %v259_v0 }
  0x54 PF: > { %s11_s8 = sadd.s32 1, %s521_s8   ;;  %s636_s6 = smov %s517_s7 }
  0x55   : > { %p8_p5 = scmp.ge.s32.totalorder %s11_s8, 4   ;;  %s637_s7 = smov %s639_s9 }
  0x57   :  { %10 = sbr.rel (!%p8_p5) target bundleno = 2 (0x2), region = 54 }

</bundles_post_ra>
